<compile_context>
chip_gen: v5e
topology: v5e:2x2
jax: 0.10.0
libtpu: 0.0.40
codegen_flags: <defaults>
</compile_context>

<pallas_src>
import functools

import jax
import jax.numpy as jnp
from jax.experimental import pallas as pl
from jax.experimental.pallas import tpu as pltpu


def _seblock_kernel(x_ref, w1e_ref, w2_ref, o_ref, *, w_rep):
    """Fused SE block for one batch tile.  x_ref block: (Nb, H, W*C)."""
    # ---- squeeze: sum over H (sublane reduce), f32 accumulation on the fly ----
    pooled = jnp.sum(x_ref[...].astype(jnp.float32), axis=1)          # (Nb, W*C)

    # ---- excitation: the per-w segment sum + 1/(H*W) + W1 are folded into
    #      w1e_ref (= tile(W1^T, (W,1)) / (H*W)), so one MXU dot == relu(W1(avg)).
    h = jnp.maximum(
        jnp.dot(pooled, w1e_ref[...], preferred_element_type=jnp.float32), 0.0)  # (Nb, Chid)
    z = jnp.dot(h, w2_ref[...], preferred_element_type=jnp.float32)   # (Nb, C)
    gate = jax.nn.sigmoid(z)                                          # (Nb, C)

    # ---- scale: repeat the per-channel gate W times along lanes so it lines up
    #      with the lane-dense (W*C) layout, broadcast over H, multiply, store.
    gate_wide = jnp.tile(gate, (1, w_rep))                            # (Nb, W*C)
    o_ref[...] = (x_ref[...].astype(jnp.float32)
                  * gate_wide[:, None, :]).astype(o_ref.dtype)


def _choose_batch_tile(n, per_image_bytes, *, target_bytes=2 << 20, min_steps=8):
    """Largest divisor of n whose block stays under target_bytes, preferring to
    keep >= min_steps grid steps so the v7x megacore pipeline stays fed."""
    divisors = [d for d in range(1, n + 1) if n % d == 0]
    fit = [d for d in divisors if d * per_image_bytes <= target_bytes] or [1]
    deep = [d for d in fit if n // d >= min_steps]
    return max(deep) if deep else max(fit)


def seblock_pallas_nhwc(x_nhwc, w1, w2):
    """SE block on an NHWC tensor.

    x_nhwc: (N, H, W, C)
    w1:     (C//ratio, C)   PyTorch nn.Linear weight of W1 (out, in), no bias
    w2:     (C, C//ratio)   PyTorch nn.Linear weight of W2 (out, in), no bias
    """
    N, H, W, C = x_nhwc.shape
    Chid = w1.shape[0]
    assert w1.shape == (Chid, C) and w2.shape == (C, Chid)

    # Lane-dense view (free row-major merge of the last two axes).
    x_lane = x_nhwc.reshape(N, H, W * C)

    # Fold the per-w segment sum and the 1/(H*W) mean into W1 (done once, tiny).
    w1_eff = (jnp.tile(w1.T, (W, 1)) / float(H * W)).astype(jnp.float32)  # (W*C, Chid)
    w2_t = w2.T.astype(jnp.float32)                                       # (Chid, C)

    per_image_bytes = H * W * C * x_nhwc.dtype.itemsize
    nb = _choose_batch_tile(N, per_image_bytes)
    block_bytes = nb * per_image_bytes
    weight_bytes = (w1_eff.size + w2_t.size) * 4
    # input + output blocks are both double-buffered by the auto-pipeline.
    vmem_need = 4 * block_bytes + 2 * weight_bytes + (1 << 20)
    if vmem_need > (48 << 20):
        # TODO(synk): for single images larger than the VMEM budget, split H over a
        # second grid axis with a two-pass scheme (pooled-sum kernel, then a
        # gate/scale kernel) instead of one whole-image block.
        raise NotImplementedError(
            f"image slab too large for the single-pass SE kernel ({vmem_need} bytes)")

    kern = functools.partial(_seblock_kernel, w_rep=W)
    out = pl.pallas_call(
        kern,
        out_shape=jax.ShapeDtypeStruct((N, H, W * C), x_nhwc.dtype),
        grid_spec=pltpu.PrefetchScalarGridSpec(
            num_scalar_prefetch=0,
            grid=(N // nb,),
            in_specs=[
                pl.BlockSpec((nb, H, W * C), lambda n: (n, 0, 0)),   # x (lane-dense)
                pl.BlockSpec((W * C, Chid), lambda n: (0, 0)),       # folded W1
                pl.BlockSpec((Chid, C), lambda n: (0, 0)),           # W2^T
            ],
            out_specs=pl.BlockSpec((nb, H, W * C), lambda n: (n, 0, 0)),
        ),
        compiler_params=pltpu.CompilerParams(
            dimension_semantics=("parallel",),          # batch tiles across TCs
            vmem_limit_bytes=max(32 << 20, vmem_need),  # <= 48 MiB by construction
        ),
    )(x_lane, w1_eff, w2_t)
    return out.reshape(N, H, W, C)


def seblock_pallas_nchw(x_nchw, w1, w2):
    """PyTorch-layout entry point: NCHW in, NCHW out (layout plumbing only)."""
    x_nhwc = jnp.transpose(x_nchw, (0, 2, 3, 1))
    out = seblock_pallas_nhwc(x_nhwc, w1, w2)
    return jnp.transpose(out, (0, 3, 1, 2))


# ----------------------------- reference (pure JAX) ---------------------------
def ref_forward_nchw(x_nchw, w1, w2):
    xf = x_nchw.astype(jnp.float32)
    avg = jnp.mean(xf, axis=(2, 3))                                   # (N, C)
    h = jnp.maximum(avg @ w1.astype(jnp.float32).T, 0.0)              # (N, Chid)
    g = jax.nn.sigmoid(h @ w2.astype(jnp.float32).T)                  # (N, C)
    return xf * g[:, :, None, None]


if __name__ == "__main__":
    def make_case(key, N, C, H, W, ratio, dtype):
        kx, k1, k2 = jax.random.split(key, 3)
        chid = C // ratio
        x = jax.random.normal(kx, (N, C, H, W), jnp.float32).astype(dtype)
        # nn.Linear weights (out_features, in_features), kaiming-normal style, no bias
        w1 = jnp.sqrt(2.0 / C) * jax.random.normal(k1, (chid, C), jnp.float32)
        w2 = jnp.sqrt(2.0 / chid) * jax.random.normal(k2, (C, chid), jnp.float32)
        return x, w1, w2

    key = jax.random.PRNGKey(0)
    ka, kb, kc = jax.random.split(key, 3)

    # Case 1: spec-like small case -- SEBlock(in_channels=32, ratio=8), f32, N=2.
    x, w1, w2 = make_case(ka, N=2, C=32, H=16, W=16, ratio=8, dtype=jnp.float32)
    out = jax.block_until_ready(seblock_pallas_nchw(x, w1, w2))
    ref = ref_forward_nchw(x, w1, w2)
    assert out.shape == x.shape
    err = float(jnp.max(jnp.abs(out.astype(jnp.float32) - ref)))
    assert err < 1e-4, f"f32 case-1 max err {err}"

    # Case 2: larger batch -> exercises Nb>1 batched blocks and a multi-step grid.
    x, w1, w2 = make_case(kb, N=16, C=32, H=8, W=8, ratio=8, dtype=jnp.float32)
    out = jax.block_until_ready(seblock_pallas_nchw(x, w1, w2))
    ref = ref_forward_nchw(x, w1, w2)
    err = float(jnp.max(jnp.abs(out.astype(jnp.float32) - ref)))
    assert err < 1e-4, f"f32 case-2 max err {err}"

    # Case 3: bf16 I/O (halves HBM bytes); pooling/MLP still accumulate in f32.
    x, w1, w2 = make_case(kc, N=4, C=32, H=16, W=16, ratio=8, dtype=jnp.bfloat16)
    out = jax.block_until_ready(seblock_pallas_nchw(x, w1, w2))
    ref = ref_forward_nchw(x, w1, w2)
    err = float(jnp.max(jnp.abs(out.astype(jnp.float32) - ref)))
    assert err < 5e-2, f"bf16 case max err {err}"

    print("KERNEL_OK")
</pallas_src>

<mosaic_0001>
module attributes {stable_mosaic.version = 11 : i64} {
  func.func @_seblock_kernel(%arg0: i32, %arg1: memref<2x16x512xf32, #tpu.memory_space<vmem>>, %arg2: memref<512x4xf32, #tpu.memory_space<vmem>>, %arg3: memref<4x32xf32, #tpu.memory_space<vmem>>, %arg4: memref<2x16x512xf32, #tpu.memory_space<vmem>>) attributes {dimension_semantics = [#tpu.dimension_semantics<parallel>], iteration_bounds = array<i64: 1>, scalar_prefetch = 0 : i64, scratch_operands = 0 : i64, tpu.core_type = #tpu.core_type<tc>, window_params = [{transform_indices = @transform_0, window_bounds = array<i64: 2, 16, 512>}, {pipeline_mode = #tpu.pipeline_mode<synchronous>, transform_indices = @transform_1, window_bounds = array<i64: 512, 4>}, {pipeline_mode = #tpu.pipeline_mode<synchronous>, transform_indices = @transform_2, window_bounds = array<i64: 4, 32>}, {transform_indices = @transform_3, window_bounds = array<i64: 2, 16, 512>}]} {
    %c0 = arith.constant 0 : index
    %c0_0 = arith.constant 0 : index
    %c0_1 = arith.constant 0 : index
    %0 = vector.load %arg1[%c0, %c0_0, %c0_1] : memref<2x16x512xf32, #tpu.memory_space<vmem>>, vector<2x16x512xf32>
    %cst = arith.constant dense<0.000000e+00> : vector<2x512xf32>
    %1 = vector.multi_reduction <add>, %0, %cst [1] : vector<2x16x512xf32> to vector<2x512xf32>
    %c0_2 = arith.constant 0 : index
    %c0_3 = arith.constant 0 : index
    %2 = vector.load %arg2[%c0_2, %c0_3] : memref<512x4xf32, #tpu.memory_space<vmem>>, vector<512x4xf32>
    %cst_4 = arith.constant dense<0.000000e+00> : vector<2x4xf32>
    %3 = tpu.matmul %1, %2, %cst_4 {dimension_numbers = #tpu.dot_dimension_numbers<[1], [0], [0], [1], [0, 0, 1, 1], [], []>} : vector<2x512xf32>, vector<512x4xf32>, vector<2x4xf32> -> vector<2x4xf32>
    %cst_5 = arith.constant 0.000000e+00 : f32
    %4 = vector.broadcast %cst_5 : f32 to vector<2x4xf32>
    %5 = arith.maximumf %3, %4 : vector<2x4xf32>
    %c0_6 = arith.constant 0 : index
    %c0_7 = arith.constant 0 : index
    %6 = vector.load %arg3[%c0_6, %c0_7] : memref<4x32xf32, #tpu.memory_space<vmem>>, vector<4x32xf32>
    %cst_8 = arith.constant dense<0.000000e+00> : vector<2x32xf32>
    %7 = tpu.matmul %5, %6, %cst_8 {dimension_numbers = #tpu.dot_dimension_numbers<[1], [0], [0], [1], [0, 0, 1, 1], [], []>} : vector<2x4xf32>, vector<4x32xf32>, vector<2x32xf32> -> vector<2x32xf32>
    %8 = arith.negf %7 : vector<2x32xf32>
    %9 = math.exp %8 : vector<2x32xf32>
    %cst_9 = arith.constant 1.000000e+00 : f32
    %10 = vector.broadcast %cst_9 : f32 to vector<2x32xf32>
    %11 = arith.addf %10, %9 : vector<2x32xf32>
    %12 = arith.divf %10, %11 : vector<2x32xf32>
    %13 = tpu.concatenate %12, %12, %12, %12, %12, %12, %12, %12, %12, %12, %12, %12, %12, %12, %12, %12 in 1 : vector<2x32xf32>, vector<2x32xf32>, vector<2x32xf32>, vector<2x32xf32>, vector<2x32xf32>, vector<2x32xf32>, vector<2x32xf32>, vector<2x32xf32>, vector<2x32xf32>, vector<2x32xf32>, vector<2x32xf32>, vector<2x32xf32>, vector<2x32xf32>, vector<2x32xf32>, vector<2x32xf32>, vector<2x32xf32> -> vector<2x512xf32>
    %c0_10 = arith.constant 0 : index
    %c0_11 = arith.constant 0 : index
    %c0_12 = arith.constant 0 : index
    %14 = vector.load %arg1[%c0_10, %c0_11, %c0_12] : memref<2x16x512xf32, #tpu.memory_space<vmem>>, vector<2x16x512xf32>
    %15 = vector.shape_cast %13 : vector<2x512xf32> to vector<2x1x512xf32>
    %16 = vector.broadcast %15 : vector<2x1x512xf32> to vector<2x16x512xf32>
    %17 = arith.mulf %14, %16 : vector<2x16x512xf32>
    %c0_13 = arith.constant 0 : index
    %c0_14 = arith.constant 0 : index
    %c0_15 = arith.constant 0 : index
    %18 = vector.load %arg4[%c0_13, %c0_14, %c0_15] : memref<2x16x512xf32, #tpu.memory_space<vmem>>, vector<2x16x512xf32>
    tpu.vector_store %arg4[%c0_13, %c0_14, %c0_15], %17 {strides = array<i32>} : memref<2x16x512xf32, #tpu.memory_space<vmem>>, vector<2x16x512xf32>,
    return
  }
  func.func @transform_0(%arg0: i32) -> (i32, i32, i32) {
    %c0_i32 = arith.constant 0 : i32
    %c0_i32_0 = arith.constant 0 : i32
    %c0_i32_1 = arith.constant 0 : i32
    return %arg0, %c0_i32, %c0_i32_0 : i32, i32, i32
  }
  func.func @transform_1(%arg0: i32) -> (i32, i32) {
    %c0_i32 = arith.constant 0 : i32
    %c0_i32_0 = arith.constant 0 : i32
    %c0_i32_1 = arith.constant 0 : i32
    return %c0_i32, %c0_i32_0 : i32, i32
  }
  func.func @transform_2(%arg0: i32) -> (i32, i32) {
    %c0_i32 = arith.constant 0 : i32
    %c0_i32_0 = arith.constant 0 : i32
    %c0_i32_1 = arith.constant 0 : i32
    return %c0_i32, %c0_i32_0 : i32, i32
  }
  func.func @transform_3(%arg0: i32) -> (i32, i32, i32) {
    %c0_i32 = arith.constant 0 : i32
    %c0_i32_0 = arith.constant 0 : i32
    %c0_i32_1 = arith.constant 0 : i32
    return %arg0, %c0_i32, %c0_i32_0 : i32, i32, i32
  }
}

</mosaic_0001>

<bundles_post_ra>
// kernel: tpu_custom_call.1
= control target key start
LH: loop header
LB: loop body
LE: loop exit
PB: predicated region body
PF: predicated region fallthrough
CT: control target
= control target key end

     0   :  { %vm159_vm0 = vcmask 1041409   ;;  %s775_s0 = inlined_call_operand.vmem [shape: f32[2,16,512], index: 0, kind: input, shape index: {}]   ;;  %s776_s1 = inlined_call_operand.vmem [shape: f32[512,4], index: 1, kind: input, shape index: {}]   ;;  %s777_s2 = inlined_call_operand.vmem [shape: f32[4,32], index: 2, kind: input, shape index: {}]   ;;  %s778_s3 = inlined_call_operand.hbm [shape: f32[2,16,512], index: 3, kind: output, shape index: {}]  }
   0x1   :  { %v134_v0 = vld [vmem:[%s776_s1 + $0x178] sm:$0xff]  ;;  %v133_v1 = vld [vmem:[%s776_s1 + $0x170] sm:$0xff]  ;;  %v132_v5 = vld [vmem:[%s776_s1 + $0x168] sm:$0xff] }
   0x2   :  { %v150_v2 = vld [vmem:[%s776_s1 + $0x1f8] sm:$0xff]  ;;  %208 = vmatpush.msra.mxu2 %v134_v0  ;;  %v149_v6 = vld [vmem:[%s776_s1 + $0x1f0] sm:$0xff]  ;;  %v148_v9 = vld [vmem:[%s776_s1 + $0x1e8] sm:$0xff] }
   0x3   :  { %228 = vmatpush.msra.mxu3 %v150_v2  ;;  %v102_v3 = vld [vmem:[%s776_s1 + $0x78] sm:$0xff]  ;;  %v101_v7 = vld [vmem:[%s776_s1 + $0x70] sm:$0xff]  ;;  %v100_v10 = vld [vmem:[%s776_s1 + $0x68] sm:$0xff] }
   0x4   :  { %v118_v4 = vld [vmem:[%s776_s1 + $0xf8] sm:$0xff]  ;;  %168 = vmatpush.msra.mxu0 %v102_v3  ;;  %v117_v8 = vld [vmem:[%s776_s1 + $0xf0] sm:$0xff]  ;;  %209 = vmatpush.msra.mxu2 %v133_v1  ;;  %v131_v11 = vld [vmem:[%s776_s1 + $0x160] sm:$0xff] }
   0x5   :  { %188 = vmatpush.msra.mxu1 %v118_v4  ;;  %229 = vmatpush.msra.mxu3 %v149_v6  ;;  %v116_v12 = vld [vmem:[%s776_s1 + $0xe8] sm:$0xff]  ;;  %v147_v13 = vld [vmem:[%s776_s1 + $0x1e0] sm:$0xff]  ;;  %v130_v16 = vld [vmem:[%s776_s1 + $0x158] sm:$0xff] }
   0x6   :  { %169 = vmatpush.msra.mxu0 %v101_v7  ;;  %210 = vmatpush.msra.mxu2 %v132_v5  ;;  %v99_v14 = vld [vmem:[%s776_s1 + $0x60] sm:$0xff]  ;;  %v146_v17 = vld [vmem:[%s776_s1 + $0x1d8] sm:$0xff]  ;;  %v129_v20 = vld [vmem:[%s776_s1 + $0x150] sm:$0xff] }
   0x7   :  { %189 = vmatpush.msra.mxu1 %v117_v8  ;;  %230 = vmatpush.msra.mxu3 %v148_v9  ;;  %v115_v15 = vld [vmem:[%s776_s1 + $0xe0] sm:$0xff]  ;;  %v98_v18 = vld [vmem:[%s776_s1 + $0x58] sm:$0xff]  ;;  %v145_v21 = vld [vmem:[%s776_s1 + $0x1d0] sm:$0xff] }
   0x8   :  { %170 = vmatpush.msra.mxu0 %v100_v10  ;;  %211 = vmatpush.msra.mxu2 %v131_v11  ;;  %v114_v19 = vld [vmem:[%s776_s1 + $0xd8] sm:$0xff]  ;;  %v97_v22 = vld [vmem:[%s776_s1 + $0x50] sm:$0xff]  ;;  %v128_v24 = vld [vmem:[%s776_s1 + $0x148] sm:$0xff] }
   0x9   :  { %190 = vmatpush.msra.mxu1 %v116_v12  ;;  %231 = vmatpush.msra.mxu3 %v147_v13  ;;  %v113_v23 = vld [vmem:[%s776_s1 + $0xd0] sm:$0xff]  ;;  %v144_v25 = vld [vmem:[%s776_s1 + $0x1c8] sm:$0xff]  ;;  %v127_v28 = vld [vmem:[%s776_s1 + $0x140] sm:$0xff] }
   0xa   :  { %171 = vmatpush.msra.mxu0 %v99_v14  ;;  %212 = vmatpush.msra.mxu2 %v130_v16  ;;  %v96_v26 = vld [vmem:[%s776_s1 + $0x48] sm:$0xff]  ;;  %v143_v29 = vld [vmem:[%s776_s1 + $0x1c0] sm:$0xff]  ;;  %v126_v32 = vld [vmem:[%s776_s1 + $0x138] sm:$0xff] }
   0xb   :  { %191 = vmatpush.msra.mxu1 %v115_v15  ;;  %232 = vmatpush.msra.mxu3 %v146_v17  ;;  %v112_v27 = vld [vmem:[%s776_s1 + $0xc8] sm:$0xff]  ;;  %v95_v30 = vld [vmem:[%s776_s1 + $0x40] sm:$0xff]  ;;  %v142_v33 = vld [vmem:[%s776_s1 + $0x1b8] sm:$0xff] }
   0xc   :  { %172 = vmatpush.msra.mxu0 %v98_v18  ;;  %213 = vmatpush.msra.mxu2 %v129_v20  ;;  %v111_v31 = vld [vmem:[%s776_s1 + $0xc0] sm:$0xff]  ;;  %v94_v34 = vld [vmem:[%s776_s1 + $0x38] sm:$0xff]  ;;  %v125_v36 = vld [vmem:[%s776_s1 + $0x130] sm:$0xff] }
   0xd   :  { %192 = vmatpush.msra.mxu1 %v114_v19  ;;  %233 = vmatpush.msra.mxu3 %v145_v21  ;;  %v110_v35 = vld [vmem:[%s776_s1 + $0xb8] sm:$0xff]  ;;  %v124_v37 = vld [vmem:[%s776_s1 + $0x128] sm:$0xff]  ;;  %v141_v38 = vld [vmem:[%s776_s1 + $0x1b0] sm:$0xff] }
   0xe   :  { %173 = vmatpush.msra.mxu0 %v97_v22  ;;  %214 = vmatpush.msra.mxu2 %v128_v24  ;;  %v93_v39 = vld [vmem:[%s776_s1 + $0x30] sm:$0xff]  ;;  %v140_v41 = vld [vmem:[%s776_s1 + $0x1a8] sm:$0xff]  ;;  %v123_v42 = vld [vmem:[%s776_s1 + $0x120] sm:$0xff] }
   0xf   :  { %193 = vmatpush.msra.mxu1 %v113_v23  ;;  %234 = vmatpush.msra.mxu3 %v144_v25  ;;  %v109_v40 = vld [vmem:[%s776_s1 + $0xb0] sm:$0xff]  ;;  %v92_v43 = vld [vmem:[%s776_s1 + $0x28] sm:$0xff]  ;;  %v139_v45 = vld [vmem:[%s776_s1 + $0x1a0] sm:$0xff] }
  0x10   :  { %174 = vmatpush.msra.mxu0 %v96_v26  ;;  %215 = vmatpush.msra.mxu2 %v127_v28  ;;  %v108_v44 = vld [vmem:[%s776_s1 + $0xa8] sm:$0xff]  ;;  %v91_v46 = vld [vmem:[%s776_s1 + $0x20] sm:$0xff]  ;;  %v605_v48 = vld [vmem:[%s775_s0 + $0x10] sm:$0xff] }
  0x11   :  { %194 = vmatpush.msra.mxu1 %v112_v27  ;;  %235 = vmatpush.msra.mxu3 %v143_v29  ;;  %v107_v47 = vld [vmem:[%s776_s1 + $0xa0] sm:$0xff]  ;;  %v122_v49 = vld [vmem:[%s776_s1 + $0x118] sm:$0xff]  ;;  %v613_v50 = vld [vmem:[%s775_s0 + $0x30] sm:$0xff] }
  0x12   :  { %175 = vmatpush.msra.mxu0 %v95_v30  ;;  %216 = vmatpush.msra.mxu2 %v126_v32  ;;  %v618_v51 = vld [vmem:[%s775_s0 + $0x50] sm:$0xff]  ;;  %v138_v53 = vld [vmem:[%s776_s1 + $0x198] sm:$0xff]  ;;  %v45_v56 = vadd.f32 %v613_v50, %v605_v48  ;;  %v120_v5 = vld [vmem:[%s776_s1 + $0x108] sm:$0xff] }
  0x13   :  { %195 = vmatpush.msra.mxu1 %v111_v31  ;;  %236 = vmatpush.msra.mxu3 %v142_v33  ;;  %v623_v52 = vld [vmem:[%s775_s0 + $0x70] sm:$0xff]  ;;  %v90_v54 = vld [vmem:[%s776_s1 + $0x18] sm:$0xff]  ;;  %v136_v6 = vld [vmem:[%s776_s1 + $0x188] sm:$0xff] }
  0x14   :  { %176 = vmatpush.msra.mxu0 %v94_v34  ;;  %217 = vmatpush.msra.mxu2 %v125_v36  ;;  %v106_v55 = vld [vmem:[%s776_s1 + $0x98] sm:$0xff]  ;;  %v73_v57 = vadd.f32 %v623_v52, %v618_v51  ;;  %v121_v58 = vld [vmem:[%s776_s1 + $0x110] sm:$0xff]  ;;  %v46_v1 = vrot.slane %v45_v56, 4  ;;  %v683_v8 = vld [vmem:[%s775_s0] sm:$0xff] }
  0x15   :  { %196 = vmatpush.msra.mxu1 %v110_v35  ;;  %237 = vmatpush.msra.mxu3 %v141_v38  ;;  %v137_v59 = vld [vmem:[%s776_s1 + $0x190] sm:$0xff]  ;;  %v647_v60 = vld [vmem:[%s775_s0 + $0x18] sm:$0xff]  ;;  %v688_v9 = vld [vmem:[%s775_s0 + $0x20] sm:$0xff] }
  0x16   :  { %177 = vmatpush.msra.mxu0 %v93_v39  ;;  %218 = vmatpush.msra.mxu2 %v124_v37  ;;  %v652_v61 = vld [vmem:[%s775_s0 + $0x38] sm:$0xff]  ;;  %v89_v63 = vld [vmem:[%s776_s1 + $0x10] sm:$0xff]  ;;  %v74_v2 = vrot.slane %v73_v57, 4  ;;  %v693_v10 = vld [vmem:[%s775_s0 + $0x40] sm:$0xff]  ;;  %v47_v11 = vadd.f32 %v46_v1, %v45_v56  ;;  %v31_v15 = vadd.f32 %v688_v9, %v683_v8 }
  0x17   :  { %197 = vmatpush.msra.mxu1 %v109_v40  ;;  %238 = vmatpush.msra.mxu3 %v140_v41  ;;  %v657_v62 = vld [vmem:[%s775_s0 + $0x58] sm:$0xff]  ;;  %v105_v0 = vld [vmem:[%s776_s1 + $0x90] sm:$0xff]  ;;  %v52_v4 = vadd.f32 %v652_v61, %v647_v60  ;;  %v698_v14 = vld [vmem:[%s775_s0 + $0x60] sm:$0xff] }
  0x18   :  { %178 = vmatpush.msra.mxu0 %v92_v43  ;;  %219 = vmatpush.msra.mxu2 %v123_v42  ;;  %v668_v3 = vld [vmem:[%s775_s0 + $0x78] sm:$0xff]  ;;  %v75_v12 = vadd.f32 %v74_v2, %v73_v57  ;;  %v705_v16 = vld [vmem:[%s775_s0 + $0x8] sm:$0xff]  ;;  %v59_v19 = vadd.f32 %v698_v14, %v693_v10 }
  0x19   :  { %198 = vmatpush.msra.mxu1 %v108_v44  ;;  %239 = vmatpush.msra.mxu3 %v139_v45  ;;  %v80_v7 = vadd.f32 %v668_v3, %v657_v62  ;;  %v53_v13 = vrot.slane %v52_v4, 4  ;;  %v710_v17 = vld [vmem:[%s775_s0 + $0x28] sm:$0xff] }
  0x1a   :  { %179 = vmatpush.msra.mxu0 %v91_v46  ;;  %220 = vmatpush.msra.mxu2 %v122_v49  ;;  %v717_v20 = vld [vmem:[%s775_s0 + $0x48] sm:$0xff]  ;;  %v38_v22 = vadd.f32 %v710_v17, %v705_v16 }
  0x1b   :  { %199 = vmatpush.msra.mxu1 %v107_v47  ;;  %240 = vmatpush.msra.mxu3 %v138_v53  ;;  %v81_v18 = vrot.slane %v80_v7, 4  ;;  %v722_v21 = vld [vmem:[%s775_s0 + $0x68] sm:$0xff] }
  0x1c   :  { %180 = vmatpush.msra.mxu0 %v90_v54 }
  0x1d   :  { %200 = vmatpush.msra.mxu1 %v106_v55 }
  0x1e   :  { %8 = vsyncpa [#allocation3], 0  ;;  %221 = vmatpush.msra.mxu2 %v121_v58  ;;  %241 = vmatpush.msra.mxu3 %v137_v59  ;;  %v48_v23 = vrot.slane %v47_v11, 2  ;;  %v76_v24 = vrot.slane %v75_v12, 2  ;;  %v88_v25 = vld [vmem:[%s776_s1 + $0x8] sm:$0xff]  ;;  %v54_v27 = vadd.f32 %v53_v13, %v52_v4  ;;  %v32_v28 = vrot.slane %v31_v15, 4 }
  0x1f   :  { %v104_v26 = vld [vmem:[%s776_s1 + $0x88] sm:$0xff]  ;;  %181 = vmatpush.msra.mxu0 %v89_v63  ;;  %201 = vmatpush.msra.mxu1 %v105_v0  ;;  %v119_v29 = vld [vmem:[%s776_s1 + $0x100] sm:$0xff]  ;;  %v82_v31 = vadd.f32 %v81_v18, %v80_v7  ;;  %v60_v32 = vrot.slane %v59_v19, 4  ;;  %v39_v33 = vrot.slane %v38_v22, 4  ;;  %v66_v34 = vadd.f32 %v722_v21, %v717_v20  ;;  %s434_s10 = smov 32   ;;  %s435_s11 = smov 64  }
  0x20   :  { %v135_v30 = vld [vmem:[%s776_s1 + $0x180] sm:$0xff]  ;;  %222 = vmatpush.msra.mxu2 %v120_v5  ;;  %242 = vmatpush.msra.mxu3 %v136_v6  ;;  %v49_v35 = vadd.f32 %v48_v23, %v47_v11  ;;  %v77_v36 = vadd.f32 %v76_v24, %v75_v12  ;;  %v55_v37 = vrot.slane %v54_v27, 2  ;;  %v33_v40 = vadd.f32 %v32_v28, %v31_v15  ;;  %s436_s12 = smov [#allocation2]   ;;  %s383_s16 = sshll.u32 %s778_s3, 4  ;;  %s384_s16 = int_to_ptr.hbm [resolvable:$true] %s383_s16 }
  0x21   :  { %v87_v38 = vld [vmem:[%s776_s1] sm:$0xff]  ;;  %182 = vmatpush.msra.mxu0 %v88_v25  ;;  %202 = vmatpush.msra.mxu1 %v104_v26  ;;  %v83_v41 = vrot.slane %v82_v31, 2  ;;  %v61_v42 = vadd.f32 %v60_v32, %v59_v19  ;;  %v40_v43 = vadd.f32 %v39_v33, %v38_v22  ;;  %v67_v44 = vrot.slane %v66_v34, 4  ;;  %s381_s13 = sshll.u32 %s436_s12, 4  ;;  %s437_s17 = smov 512   ;;  %s382_s13 = int_to_ptr.vmem [resolvable:$true] %s381_s13 }
  0x22   :  { %v103_v39 = vld [vmem:[%s776_s1 + $0x80] sm:$0xff]  ;;  %223 = vmatpush.msra.mxu2 %v119_v29  ;;  %v50_v45 = vrot.slane %v49_v35, 1  ;;  %v78_v46 = vrot.slane %v77_v36, 1  ;;  %243 = vmatpush.msra.mxu3 %v135_v30  ;;  %v56_v47 = vadd.f32 %v55_v37, %v54_v27  ;;  %v34_v49 = vrot.slane %v33_v40, 2 }
  0x23   :  { %v84_v53 = vadd.f32 %v83_v41, %v82_v31  ;;  %183 = vmatpush.msra.mxu0 %v87_v38  ;;  %203 = vmatpush.msra.mxu1 %v103_v39  ;;  %v62_v54 = vrot.slane %v61_v42, 2  ;;  %v41_v55 = vrot.slane %v40_v43, 2  ;;  %v68_v56 = vadd.f32 %v67_v44, %v66_v34  ;;  %v249_v28 = vld [vmem:[%s777_s2] sm:$0xf]  ;;  %s433_s2 = smov 96  }
  0x24   :  { %v51_v57 = vadd.f32 %v50_v45, %v49_v35  ;;  %v79_v58 = vadd.f32 %v78_v46, %v77_v36  ;;  %v57_v59 = vrot.slane %v56_v47, 1  ;;  %v35_v63 = vadd.f32 %v34_v49, %v33_v40 }
  0x25   :  { %v85_v0 = vrot.slane %v84_v53, 1  ;;  %v63_v1 = vadd.f32 %v62_v54, %v61_v42  ;;  %v42_v2 = vadd.f32 %v41_v55, %v40_v43  ;;  %v69_v4 = vrot.slane %v68_v56, 2 }
  0x26   :  { %v162_v5 = vsel %vm159_vm0, %v79_v58, %v51_v57  ;;  %v58_v6 = vadd.f32 %v57_v59, %v56_v47  ;;  %v36_v7 = vrot.slane %v35_v63, 1  ;;  %vm254_vm1 = vcmask 1043456  }
  0x27   :  { %224 = vmatmul.f32.vlgmr.msra.gmra.mxu2 %v162_v5  ;;  %v86_v11 = vadd.f32 %v85_v0, %v84_v53  ;;  %v64_v12 = vrot.slane %v63_v1, 1  ;;  %v43_v13 = vrot.slane %v42_v2, 1  ;;  %v70_v15 = vadd.f32 %v69_v4, %v68_v56  ;;  %395 = vmatpush.msk.msrb.mxu0 %vm254_vm1, %v249_v28 }
  0x28   :  { %v37_v18 = vadd.f32 %v36_v7, %v35_v63  ;;  %vm250_vm2 = vcmask 31744   ;;  %vm307_vm7 = vcmask 261120   ;;  %vm309_vm8 = vcmask 523264  }
  0x29   :  { %v163_v19 = vsel %vm159_vm0, %v86_v11, %v58_v6  ;;  %v65_v22 = vadd.f32 %v64_v12, %v63_v1  ;;  %v44_v23 = vadd.f32 %v43_v13, %v42_v2  ;;  %v71_v24 = vrot.slane %v70_v15, 1 }
  0x2a   :  { %244 = vmatmul.f32.vlgmr.msra.gmra.mxu3 %v163_v19  ;;  %vm311_vm9 = vcmask 785408   ;;  %vm317_vm10 = vcmask 1040384   ;;  %vm319_vm11 = vcmask 1042434   ;;  %vm321_vm12 = vcmask 1041408  }
  0x2b   :  { %v160_v25 = vsel %vm159_vm0, %v65_v22, %v37_v18  ;;  %v72_v26 = vadd.f32 %v71_v24, %v70_v15  ;;  %vm324_vm13 = vcmask 1043459   ;;  %vm326_vm14 = vcmask 1042433  }
  0x2c   :  { %184 = vmatmul.f32.vlgmr.msra.gmra.mxu0 %v160_v25 }
  0x2d   :  { %v161_v27 = vsel %vm159_vm0, %v72_v26, %v44_v23 }
  0x2e   :  { %204 = vmatmul.f32.vlgmr.msra.gmra.mxu1 %v161_v27 }
  0xa9   :  { %v185_v29 = vpop.f32.mrf.mxu0 }
  0xaa   :  { %v225_v31 = vpop.f32.mrf.mxu2 }
  0xab   :  { %v205_v30 = vpop.f32.mrf.mxu1 }
  0xac   :  { %v206_v32 = vadd.f32 %v205_v30, %v185_v29 }
  0xad   :  { %v245_v33 = vpop.f32.mrf.mxu3 }
  0xae   :  { %v226_v34 = vadd.f32 %v225_v31, %v206_v32 }
  0xb0   :  { %v246_v35 = vadd.f32 %v245_v33, %v226_v34 }
  0xb2   :  { %v248_v36 = vmax.f32 %v246_v35, 0.0 }
  0xb4   :  { %396 = vmatmul.msk.f32.vlgmr.msrb.gmra.mxu0 %vm250_vm2, %v248_v36 }
 0x131   :  { %v275_v37 = vpop.f32.mrf.mxu0 }
 0x132   :  { %v397_v38 = vmul.f32 -1.442695, %v275_v37 }
 0x134   :  { %403 = vpow2.f32 %v397_v38 }
 0x13a   :  { %v404_v39 = vpop.eup %403 }
 0x13b   :  { %v281_v40 = vadd.f32 1.0, %v404_v39 }
 0x13d   :  { %405 = vrcp.f32 %v281_v40  ;;  %v293_v44 = vand.u32 2147483648, %v281_v40  ;;  %v291_v46 = vand.u32 2147483647, %v281_v40  ;;  %vm287_vm4 = vweird.f32 %v281_v40 }
 0x13f   :  { %v294_v49 = vor.u32 1.1754944e-38, %v293_v44  ;;  %vm292_vm6 = vcmp.eq.f32.partialorder %v291_v46, 8.507059e+37 }
 0x143   :  { %v406_v41 = vpop.eup %405 }
 0x144   :  { %v283_v42 = vmul.f32 %v406_v41, %v281_v40  ;;  %vm288_vm3 = vweird.f32 %v406_v41 }
 0x145   :  { %vm289_vm5 = vmor %vm287_vm4, %vm288_vm3 }
 0x146   :  { %v284_v43 = vsub.f32 1.0, %v283_v42 }
 0x148   :  { %v285_v45 = vmul.f32 %v406_v41, %v284_v43 }
 0x14a   :  { %v286_v47 = vadd.f32 %v406_v41, %v285_v45 }
 0x14c   :  { %v290_v53 = vsel %vm289_vm5, %v406_v41, %v286_v47 }
 0x14d   :  { %v295_v54 = vsel %vm292_vm6, %v294_v49, %v290_v53 }
 0x14e   :  { %304 = vrot.lane.b32.xlu1 %v295_v54, %s433_s2  ;;  %298 = vrot.lane.b32.xlu0 %v295_v54, %s434_s10 }
 0x156   :  { %301 = vrot.lane.b32.xlu0 %v295_v54, %s435_s11 }
 0x1c0   :  { %v299_v55 = vpop.permute.xlu0 %298  ;;  %v305_v58 = vpop.permute.xlu1 %304 }
 0x1c1   :  { %v308_v56 = vsel %vm307_vm7, %v295_v54, %v299_v55 }
 0x1c8   :  { %v302_v57 = vpop.permute.xlu0 %301 }
 0x1c9   :  { %v310_v59 = vsel %vm309_vm8, %v308_v56, %v302_v57 }
 0x1ca   :  { %v312_v63 = vsel %vm311_vm9, %v310_v59, %v305_v58 }
 0x1cb   :  { %v314_v0 = vrot.slane %v312_v63, 7  ;;  %v315_v1 = vrot.slane %v312_v63, 6  ;;  %v316_v2 = vrot.slane %v312_v63, 5 }
 0x1cd   :  { %v318_v4 = vsel %vm317_vm10, %v312_v63, %v314_v0  ;;  %v320_v5 = vsel %vm319_vm11, %v315_v1, %v316_v2  ;;  %v323_v6 = vsel %vm159_vm0, %v312_v63, %v314_v0  ;;  %v325_v7 = vsel %vm324_vm13, %v315_v1, %v316_v2 }
 0x1ce   :  { %v322_v11 = vsel %vm321_vm12, %v318_v4, %v320_v5  ;;  %v327_v12 = vsel %vm326_vm14, %v323_v6, %v325_v7 }
 0x1cf   :  { %v329_v13 = vperm.slane %v322_v11, 0  ;;  %v330_v15 = vperm.slane %v322_v11, 1  ;;  %v331_v18 = vperm.slane %v322_v11, 2  ;;  %v328_v19 = vrot.slane %v327_v12, 1 }
 0x1d0   :  { %v332_v22 = vperm.slane %v322_v11, 3 }
 0x1d1   :  { %v345_v23 = vmul.f32 %v329_v13, %v683_v8  ;;  %v346_v24 = vmul.f32 %v330_v15, %v705_v16  ;;  %v347_v25 = vmul.f32 %v331_v18, %v605_v48  ;;  %v333_v27 = vperm.slane %v328_v19, 0 }
 0x1d2   :  { %v348_v26 = vmul.f32 %v332_v22, %v647_v60  ;;  %v349_v28 = vmul.f32 %v329_v13, %v688_v9  ;;  %v334_v29 = vperm.slane %v328_v19, 1  ;;  %v350_v30 = vmul.f32 %v330_v15, %v710_v17 }
 0x1d3   :  { %361 = vst [vmem:[#allocation2] sm:$0xff] %v345_v23  ;;  %v335_v31 = vperm.slane %v328_v19, 2  ;;  %v351_v32 = vmul.f32 %v331_v18, %v613_v50  ;;  %v336_v33 = vperm.slane %v328_v19, 3  ;;  %v352_v8 = vmul.f32 %v332_v22, %v652_v61 }
 0x1d4   :  { %362 = vst [vmem:[#allocation2 + $0x8] sm:$0xff] %v346_v24  ;;  %v353_v48 = vmul.f32 %v333_v27, %v693_v10  ;;  %v354_v60 = vmul.f32 %v334_v29, %v717_v20  ;;  %v357_v17 = vmul.f32 %v333_v27, %v698_v14  ;;  %v358_v50 = vmul.f32 %v334_v29, %v722_v21 }
 0x1d5   :  { %363 = vst [vmem:[#allocation2 + $0x10] sm:$0xff] %v347_v25  ;;  %v355_v9 = vmul.f32 %v335_v31, %v618_v51  ;;  %v356_v16 = vmul.f32 %v336_v33, %v657_v62  ;;  %v359_v61 = vmul.f32 %v335_v31, %v623_v52  ;;  %v360_v51 = vmul.f32 %v336_v33, %v668_v3 }
 0x1d6   :  { %364 = vst [vmem:[#allocation2 + $0x18] sm:$0xff] %v348_v26 }
 0x1d7   :  { %365 = vst [vmem:[#allocation2 + $0x20] sm:$0xff] %v349_v28 }
 0x1d8   :  { %366 = vst [vmem:[#allocation2 + $0x28] sm:$0xff] %v350_v30 }
 0x1d9   :  { %367 = vst [vmem:[#allocation2 + $0x30] sm:$0xff] %v351_v32 }
 0x1da   :  { %368 = vst [vmem:[#allocation2 + $0x38] sm:$0xff] %v352_v8 }
 0x1db   :  { %369 = vst [vmem:[#allocation2 + $0x40] sm:$0xff] %v353_v48 }
 0x1dc   :  { %370 = vst [vmem:[#allocation2 + $0x48] sm:$0xff] %v354_v60 }
 0x1dd   :  { %371 = vst [vmem:[#allocation2 + $0x50] sm:$0xff] %v355_v9 }
 0x1de   :  { %372 = vst [vmem:[#allocation2 + $0x58] sm:$0xff] %v356_v16 }
 0x1df   :  { %373 = vst [vmem:[#allocation2 + $0x60] sm:$0xff] %v357_v17 }
 0x1e0   :  { %374 = vst [vmem:[#allocation2 + $0x68] sm:$0xff] %v358_v50 }
 0x1e1   :  { %375 = vst [vmem:[#allocation2 + $0x70] sm:$0xff] %v359_v61 }
 0x1e2   :  { %376 = vst [vmem:[#allocation2 + $0x78] sm:$0xff] %v360_v51 }
 0x1e3   :  { %389 = dma.vmem_to_hbm [thread:$0]  %s382_s13, 2048, %s384_s16, [#allocation3], %s437_s17, %s437_s17, %s434_s10  }
 0x1e4   :  { %431 = dma.done.wait [#allocation3], 2048  }
 0x1e5   :  { %432 = vsyncadd [#allocation3], 4294965248 }
 0x1e6   :  { %394 = vsyncpa [#allocation3], 1 }

</bundles_post_ra>
